<compile_context>
chip_gen: v6e
topology: v6e:2x2x1
jax: 0.10.0
libtpu: 0.0.40
codegen_flags: <defaults>
</compile_context>

<pallas_src>
import jax
import jax.numpy as jnp
from jax.experimental import pallas as pl
from jax.experimental.pallas import tpu as pltpu

LATENT_DIM = 16
IN_DIM = 32 + 23            # 55
H1 = LATENT_DIM * 4         # 64
H2 = LATENT_DIM * 2         # 32
OUT_DIM = LATENT_DIM        # 16

DEFAULT_BLOCK_ROWS = 4096   # row-major path: rows of x per grid step  (~17 MiB peak)
DEFAULT_BLOCK_COLS = 8192   # batch-in-lanes path: batch columns per grid step (~11 MiB)


def _cdiv(a, b):
    return -(-a // b)


def _round_up(n, m):
    return _cdiv(n, m) * m


def _num_blocks(batch, block):
    """Adaptive, even (>= 2) number of batch tiles.

    >= 2 so both v7x TensorCores receive grid steps on the 'parallel' axis; even
    so the two cores stay balanced.  Adaptive sizing (cdiv(B, n) rounded up to
    the sublane/lane granule) keeps padding waste to < granule*n rows instead of
    up to a whole extra tile for batches just above a tile boundary.
    """
    n = max(2, _cdiv(max(batch, 1), block))
    return n + (n % 2)


def _vmem_limit_bytes():
    """Half of physical VMEM, capped at 64 MiB: 64 MiB on v5e/v6e, 32 MiB on v7x."""
    cap = 64 * 1024 * 1024
    try:
        cap = int(pltpu.get_tpu_info().vmem_capacity_bytes)
    except Exception:
        pass
    return max(32 * 1024 * 1024, min(64 * 1024 * 1024, cap // 2))


def _resident(shape):
    # Constant block index -> fetched once before step 0, stays VMEM-resident.
    # (pl.Buffered(1) would drop the redundant second buffer for these six small
    #  operands -- ~100-170 KiB total -- deliberately skipped for compile-safety.)
    return pl.BlockSpec(shape, lambda i: (0,) * len(shape))


# ---------------------------------------------------------------------------
# Kernels
# ---------------------------------------------------------------------------

def _encoder_kernel(x_ref, w1_ref, b1_ref, w2_ref, b2_ref, w3_ref, b3_ref, o_ref):
    """Row-major tile: x (TB, 55), batch on the sublane axis."""
    cd = w1_ref.dtype                                    # MXU operand dtype
    x = x_ref[...].astype(cd)                            # (TB, 55)
    h = jnp.dot(x, w1_ref[...], preferred_element_type=jnp.float32)
    h = jnp.maximum(h + b1_ref[...], 0.0)                # relu(fc1), f32
    h = jnp.dot(h.astype(cd), w2_ref[...], preferred_element_type=jnp.float32)
    h = jnp.maximum(h + b2_ref[...], 0.0)                # relu(fc2), f32
    h = jnp.dot(h.astype(cd), w3_ref[...], preferred_element_type=jnp.float32)
    o_ref[...] = (h + b3_ref[...]).astype(o_ref.dtype)   # fc3 (no activation)


def _encoder_tn_kernel(xt_ref, w1_ref, b1_ref, w2_ref, b2_ref, w3_ref, b3_ref, o_ref):
    """Batch-in-lanes tile: x_t (55, TB), batch on the lane axis.

    The small (out, in) weight is the streamed MXU operand (64/32/16 rows per
    256-wide batch column tile instead of all TB rows), and every activation
    (64/32/16, TB) plus the output tile is lane-dense -> unmasked stores and a
    contiguous output writeback DMA.
    """
    cd = w1_ref.dtype
    xt = xt_ref[...].astype(cd)                                           # (55, TB)
    h = jnp.dot(w1_ref[...], xt, preferred_element_type=jnp.float32)      # (64, TB)
    h = jnp.maximum(h + b1_ref[...], 0.0)
    h = jnp.dot(w2_ref[...], h.astype(cd), preferred_element_type=jnp.float32)  # (32, TB)
    h = jnp.maximum(h + b2_ref[...], 0.0)
    h = jnp.dot(w3_ref[...], h.astype(cd), preferred_element_type=jnp.float32)  # (16, TB)
    o_ref[...] = (h + b3_ref[...]).astype(o_ref.dtype)


# ---------------------------------------------------------------------------
# Wrappers
# ---------------------------------------------------------------------------

def combined_encoder(x, params, *, block_rows=DEFAULT_BLOCK_ROWS,
                     compute_dtype=jnp.bfloat16, out_dtype=None):
    """Fused fc1->relu->fc2->relu->fc3.  x: (B, 55) -> (B, 16)."""
    B, f = x.shape
    assert f == IN_DIM, f"expected feature dim {IN_DIM}, got {f}"
    out_dtype = x.dtype if out_dtype is None else out_dtype

    # Weights/biases are tiny and VMEM-resident: cast them once here.
    w1 = params["w1"].astype(compute_dtype)               # (55, 64)
    w2 = params["w2"].astype(compute_dtype)               # (64, 32)
    w3 = params["w3"].astype(compute_dtype)               # (32, 16)
    b1 = params["b1"].reshape(1, H1).astype(jnp.float32)
    b2 = params["b2"].reshape(1, H2).astype(jnp.float32)
    b3 = params["b3"].reshape(1, OUT_DIM).astype(jnp.float32)

    n = _num_blocks(B, block_rows)
    tb = _round_up(_cdiv(B, n), 8)                        # sublane granule
    b_pad = n * tb
    x_in = x if b_pad == B else jnp.pad(x, ((0, b_pad - B), (0, 0)))

    out = pl.pallas_call(
        _encoder_kernel,
        out_shape=jax.ShapeDtypeStruct((b_pad, OUT_DIM), out_dtype),
        grid_spec=pltpu.PrefetchScalarGridSpec(
            num_scalar_prefetch=0,
            grid=(n,),
            in_specs=[
                pl.BlockSpec((tb, IN_DIM), lambda i: (i, 0)),   # x rows, pipelined
                _resident(w1.shape), _resident(b1.shape),
                _resident(w2.shape), _resident(b2.shape),
                _resident(w3.shape), _resident(b3.shape),
            ],
            out_specs=pl.BlockSpec((tb, OUT_DIM), lambda i: (i, 0)),
        ),
        compiler_params=pltpu.CompilerParams(
            # 'parallel' is the documented megacore path; if a v7x trace shows a
            # single TensorCore running, switch this axis to pltpu.CORE_PARALLEL.
            dimension_semantics=("parallel",),
            vmem_limit_bytes=_vmem_limit_bytes(),
        ),
    )(x_in, w1, b1, w2, b2, w3, b3)

    return out if b_pad == B else out[:B]


def combined_encoder_tn(x_t, params, *, block_cols=DEFAULT_BLOCK_COLS,
                        compute_dtype=jnp.bfloat16, out_dtype=None):
    """Batch-in-lanes variant.  x_t: (55, B) -> (16, B).

    Use when the producer can hand over x already transposed (a materialized HBM
    transpose in this wrapper would eat the win); preferred on v6e/v7x where the
    row-major form is MXU-cadence-bound and its 16-wide output is lane-sparse.
    """
    f, B = x_t.shape
    assert f == IN_DIM, f"expected feature dim {IN_DIM}, got {f}"
    out_dtype = x_t.dtype if out_dtype is None else out_dtype

    # (out, in) weights so the small matrix is the streamed MXU operand.
    w1 = params["w1"].T.astype(compute_dtype)             # (64, 55)
    w2 = params["w2"].T.astype(compute_dtype)             # (32, 64)
    w3 = params["w3"].T.astype(compute_dtype)             # (16, 32)
    b1 = params["b1"].reshape(H1, 1).astype(jnp.float32)
    b2 = params["b2"].reshape(H2, 1).astype(jnp.float32)
    b3 = params["b3"].reshape(OUT_DIM, 1).astype(jnp.float32)

    n = _num_blocks(B, block_cols)
    tb = _round_up(_cdiv(B, n), 128)                      # lane granule
    b_pad = n * tb
    x_in = x_t if b_pad == B else jnp.pad(x_t, ((0, 0), (0, b_pad - B)))

    out = pl.pallas_call(
        _encoder_tn_kernel,
        out_shape=jax.ShapeDtypeStruct((OUT_DIM, b_pad), out_dtype),
        grid_spec=pltpu.PrefetchScalarGridSpec(
            num_scalar_prefetch=0,
            grid=(n,),
            in_specs=[
                pl.BlockSpec((IN_DIM, tb), lambda i: (0, i)),   # batch columns
                _resident(w1.shape), _resident(b1.shape),
                _resident(w2.shape), _resident(b2.shape),
                _resident(w3.shape), _resident(b3.shape),
            ],
            out_specs=pl.BlockSpec((OUT_DIM, tb), lambda i: (0, i)),
        ),
        compiler_params=pltpu.CompilerParams(
            dimension_semantics=("parallel",),
            vmem_limit_bytes=_vmem_limit_bytes(),
        ),
    )(x_in, w1, b1, w2, b2, w3, b3)

    return out if b_pad == B else out[:, :B]


# ---------------------------------------------------------------------------
# Params / reference
# ---------------------------------------------------------------------------

def init_params(key):
    """Deterministic init mimicking nn.Linear's uniform(-1/sqrt(in), 1/sqrt(in))."""
    ks = jax.random.split(key, 6)

    def linear(kw, kb, fan_in, fan_out):
        bound = 1.0 / jnp.sqrt(jnp.float32(fan_in))
        # stored (in, out) so x @ W == torch's x @ W.T with W stored (out, in)
        w = jax.random.uniform(kw, (fan_in, fan_out), jnp.float32, -bound, bound)
        b = jax.random.uniform(kb, (fan_out,), jnp.float32, -bound, bound)
        return w, b

    w1, b1 = linear(ks[0], ks[1], IN_DIM, H1)
    w2, b2 = linear(ks[2], ks[3], H1, H2)
    w3, b3 = linear(ks[4], ks[5], H2, OUT_DIM)
    return {"w1": w1, "b1": b1, "w2": w2, "b2": b2, "w3": w3, "b3": b3}


def reference_forward(x, p, compute_dtype=None):
    """Pure-JAX reference; optionally mirrors the kernel's bf16 matmul operands."""
    def lin(h, w, b):
        if compute_dtype is not None:
            h = h.astype(compute_dtype)
            w = w.astype(compute_dtype)
        return jnp.dot(h, w, preferred_element_type=jnp.float32) + b

    h1 = jax.nn.relu(lin(x, p["w1"], p["b1"]))
    h2 = jax.nn.relu(lin(h1, p["w2"], p["b2"]))
    return lin(h2, p["w3"], p["b3"])


if __name__ == "__main__":
    key = jax.random.PRNGKey(0)
    k_x, k_p = jax.random.split(key)

    B = 50                                   # small, deliberately not a multiple of 8
    x = jax.random.normal(k_x, (B, IN_DIM), jnp.float32)
    params = init_params(k_p)

    # Row-major path, default adaptive tiles (2 blocks of 32 padded rows for B=50).
    out_rows = combined_encoder(x, params)
    # Row-major path, forced 4-step grid (exercises multi-block pipeline + padding).
    out_rows_tiled = combined_encoder(x, params, block_rows=16)
    # Batch-in-lanes path (producer hands over x transposed) -> (16, B).
    out_lanes = combined_encoder_tn(x.T, params)

    jax.block_until_ready((out_rows, out_rows_tiled, out_lanes))

    ref_bf16 = reference_forward(x, params, compute_dtype=jnp.bfloat16)
    ref_f32 = reference_forward(x, params)

    assert out_rows.shape == (B, OUT_DIM), out_rows.shape
    assert out_rows_tiled.shape == (B, OUT_DIM), out_rows_tiled.shape
    assert out_lanes.shape == (OUT_DIM, B), out_lanes.shape

    for name, got in [("rows", out_rows), ("rows_tiled", out_rows_tiled),
                      ("lanes", out_lanes.T)]:
        # Tight check vs. a reference using the same bf16 operands / f32 accumulation.
        assert jnp.allclose(got, ref_bf16, atol=1e-2, rtol=0), f"{name} vs bf16 ref"
        # Loose sanity check vs. the pure-f32 reference (bf16 operand rounding only).
        assert float(jnp.max(jnp.abs(got - ref_f32))) < 0.1, f"{name} vs f32 ref"

    print("KERNEL_OK")
</pallas_src>

<mosaic_0001>
module attributes {stable_mosaic.version = 11 : i64} {
  func.func @_encoder_kernel(%arg0: i32, %arg1: memref<32x55xf32, #tpu.memory_space<vmem>>, %arg2: memref<55x64xbf16, #tpu.memory_space<vmem>>, %arg3: memref<1x64xf32, #tpu.memory_space<vmem>>, %arg4: memref<64x32xbf16, #tpu.memory_space<vmem>>, %arg5: memref<1x32xf32, #tpu.memory_space<vmem>>, %arg6: memref<32x16xbf16, #tpu.memory_space<vmem>>, %arg7: memref<1x16xf32, #tpu.memory_space<vmem>>, %arg8: memref<32x16xf32, #tpu.memory_space<vmem>>) attributes {dimension_semantics = [#tpu.dimension_semantics<parallel>], iteration_bounds = array<i64: 2>, scalar_prefetch = 0 : i64, scratch_operands = 0 : i64, tpu.core_type = #tpu.core_type<tc>, window_params = [{transform_indices = @transform_0, window_bounds = array<i64: 32, 55>}, {pipeline_mode = #tpu.pipeline_mode<synchronous>, transform_indices = @transform_1, window_bounds = array<i64: 55, 64>}, {pipeline_mode = #tpu.pipeline_mode<synchronous>, transform_indices = @transform_2, window_bounds = array<i64: 1, 64>}, {pipeline_mode = #tpu.pipeline_mode<synchronous>, transform_indices = @transform_3, window_bounds = array<i64: 64, 32>}, {pipeline_mode = #tpu.pipeline_mode<synchronous>, transform_indices = @transform_4, window_bounds = array<i64: 1, 32>}, {pipeline_mode = #tpu.pipeline_mode<synchronous>, transform_indices = @transform_5, window_bounds = array<i64: 32, 16>}, {pipeline_mode = #tpu.pipeline_mode<synchronous>, transform_indices = @transform_6, window_bounds = array<i64: 1, 16>}, {transform_indices = @transform_7, window_bounds = array<i64: 32, 16>}]} {
    %c0 = arith.constant 0 : index
    %c0_0 = arith.constant 0 : index
    %0 = vector.load %arg1[%c0, %c0_0] : memref<32x55xf32, #tpu.memory_space<vmem>>, vector<32x55xf32>
    %1 = arith.truncf %0 : vector<32x55xf32> to vector<32x55xbf16>
    %c0_1 = arith.constant 0 : index
    %c0_2 = arith.constant 0 : index
    %2 = vector.load %arg2[%c0_1, %c0_2] : memref<55x64xbf16, #tpu.memory_space<vmem>>, vector<55x64xbf16>
    %cst = arith.constant dense<0.000000e+00> : vector<32x64xf32>
    %3 = tpu.matmul %1, %2, %cst {dimension_numbers = #tpu.dot_dimension_numbers<[1], [0], [0], [1], [0, 0, 1, 1], [], []>} : vector<32x55xbf16>, vector<55x64xbf16>, vector<32x64xf32> -> vector<32x64xf32>
    %c0_3 = arith.constant 0 : index
    %c0_4 = arith.constant 0 : index
    %4 = vector.load %arg3[%c0_3, %c0_4] : memref<1x64xf32, #tpu.memory_space<vmem>>, vector<1x64xf32>
    %5 = vector.broadcast %4 : vector<1x64xf32> to vector<32x64xf32>
    %6 = arith.addf %3, %5 : vector<32x64xf32>
    %cst_5 = arith.constant 0.000000e+00 : f32
    %7 = vector.broadcast %cst_5 : f32 to vector<32x64xf32>
    %8 = arith.maximumf %6, %7 : vector<32x64xf32>
    %9 = arith.truncf %8 : vector<32x64xf32> to vector<32x64xbf16>
    %c0_6 = arith.constant 0 : index
    %c0_7 = arith.constant 0 : index
    %10 = vector.load %arg4[%c0_6, %c0_7] : memref<64x32xbf16, #tpu.memory_space<vmem>>, vector<64x32xbf16>
    %cst_8 = arith.constant dense<0.000000e+00> : vector<32x32xf32>
    %11 = tpu.matmul %9, %10, %cst_8 {dimension_numbers = #tpu.dot_dimension_numbers<[1], [0], [0], [1], [0, 0, 1, 1], [], []>} : vector<32x64xbf16>, vector<64x32xbf16>, vector<32x32xf32> -> vector<32x32xf32>
    %c0_9 = arith.constant 0 : index
    %c0_10 = arith.constant 0 : index
    %12 = vector.load %arg5[%c0_9, %c0_10] : memref<1x32xf32, #tpu.memory_space<vmem>>, vector<1x32xf32>
    %13 = vector.broadcast %12 : vector<1x32xf32> to vector<32x32xf32>
    %14 = arith.addf %11, %13 : vector<32x32xf32>
    %cst_11 = arith.constant 0.000000e+00 : f32
    %15 = vector.broadcast %cst_11 : f32 to vector<32x32xf32>
    %16 = arith.maximumf %14, %15 : vector<32x32xf32>
    %17 = arith.truncf %16 : vector<32x32xf32> to vector<32x32xbf16>
    %c0_12 = arith.constant 0 : index
    %c0_13 = arith.constant 0 : index
    %18 = vector.load %arg6[%c0_12, %c0_13] : memref<32x16xbf16, #tpu.memory_space<vmem>>, vector<32x16xbf16>
    %cst_14 = arith.constant dense<0.000000e+00> : vector<32x16xf32>
    %19 = tpu.matmul %17, %18, %cst_14 {dimension_numbers = #tpu.dot_dimension_numbers<[1], [0], [0], [1], [0, 0, 1, 1], [], []>} : vector<32x32xbf16>, vector<32x16xbf16>, vector<32x16xf32> -> vector<32x16xf32>
    %c0_15 = arith.constant 0 : index
    %c0_16 = arith.constant 0 : index
    %20 = vector.load %arg7[%c0_15, %c0_16] : memref<1x16xf32, #tpu.memory_space<vmem>>, vector<1x16xf32>
    %21 = vector.broadcast %20 : vector<1x16xf32> to vector<32x16xf32>
    %22 = arith.addf %19, %21 : vector<32x16xf32>
    %c0_17 = arith.constant 0 : index
    %c0_18 = arith.constant 0 : index
    %23 = vector.load %arg8[%c0_17, %c0_18] : memref<32x16xf32, #tpu.memory_space<vmem>>, vector<32x16xf32>
    tpu.vector_store %arg8[%c0_17, %c0_18], %22 {strides = array<i32>} : memref<32x16xf32, #tpu.memory_space<vmem>>, vector<32x16xf32>,
    return
  }
  func.func @transform_0(%arg0: i32) -> (i32, i32) {
    %c0_i32 = arith.constant 0 : i32
    %c0_i32_0 = arith.constant 0 : i32
    return %arg0, %c0_i32 : i32, i32
  }
  func.func @transform_1(%arg0: i32) -> (i32, i32) {
    %c0_i32 = arith.constant 0 : i32
    %c0_i32_0 = arith.constant 0 : i32
    %c0_i32_1 = arith.constant 0 : i32
    return %c0_i32, %c0_i32_0 : i32, i32
  }
  func.func @transform_2(%arg0: i32) -> (i32, i32) {
    %c0_i32 = arith.constant 0 : i32
    %c0_i32_0 = arith.constant 0 : i32
    %c0_i32_1 = arith.constant 0 : i32
    return %c0_i32, %c0_i32_0 : i32, i32
  }
  func.func @transform_3(%arg0: i32) -> (i32, i32) {
    %c0_i32 = arith.constant 0 : i32
    %c0_i32_0 = arith.constant 0 : i32
    %c0_i32_1 = arith.constant 0 : i32
    return %c0_i32, %c0_i32_0 : i32, i32
  }
  func.func @transform_4(%arg0: i32) -> (i32, i32) {
    %c0_i32 = arith.constant 0 : i32
    %c0_i32_0 = arith.constant 0 : i32
    %c0_i32_1 = arith.constant 0 : i32
    return %c0_i32, %c0_i32_0 : i32, i32
  }
  func.func @transform_5(%arg0: i32) -> (i32, i32) {
    %c0_i32 = arith.constant 0 : i32
    %c0_i32_0 = arith.constant 0 : i32
    %c0_i32_1 = arith.constant 0 : i32
    return %c0_i32, %c0_i32_0 : i32, i32
  }
  func.func @transform_6(%arg0: i32) -> (i32, i32) {
    %c0_i32 = arith.constant 0 : i32
    %c0_i32_0 = arith.constant 0 : i32
    %c0_i32_1 = arith.constant 0 : i32
    return %c0_i32, %c0_i32_0 : i32, i32
  }
  func.func @transform_7(%arg0: i32) -> (i32, i32) {
    %c0_i32 = arith.constant 0 : i32
    %c0_i32_0 = arith.constant 0 : i32
    return %arg0, %c0_i32 : i32, i32
  }
}

</mosaic_0001>

<bundles_post_ra>
// kernel: tpu_custom_call.1
= control target key start
LH: loop header
LB: loop body
LE: loop exit
PB: predicated region body
PF: predicated region fallthrough
CT: control target
= control target key end

     0   :  { %s780_s24 = smov 0   ;;  %s843_s0 = inlined_call_operand.vmem [shape: f32[64,55], index: 0, kind: input, shape index: {}]   ;;  %s844_s1 = inlined_call_operand.vmem [shape: bf16[55,64], index: 1, kind: input, shape index: {}]   ;;  %s845_s2 = inlined_call_operand.vmem [shape: f32[1,64], index: 2, kind: input, shape index: {}]   ;;  %s846_s3 = inlined_call_operand.vmem [shape: bf16[64,32], index: 3, kind: input, shape index: {}]   ;;  %s847_s4 = inlined_call_operand.vmem [shape: f32[1,32], index: 4, kind: input, shape index: {}]   ;;  %s848_s5 = inlined_call_operand.vmem [shape: bf16[32,16], index: 5, kind: input, shape index: {}]   ;;  %s849_s6 = inlined_call_operand.vmem [shape: f32[1,16], index: 6, kind: input, shape index: {}]   ;;  %s850_s7 = inlined_call_operand.vmem [shape: f32[64,16], index: 7, kind: output, shape index: {}]  }
   0x1 LB: > { %s634_s25 = sadd.s32 4294967295, %s737_s24   ;;  %p638_p0 = scmp.ge.s32.totalorder %s737_s24, 1  ;;  %s737_s24 = sphi %s780_s24, %s17_s24  }
   0x2   : > { %p238_p1 = scmp.lt.s32.totalorder %s737_s24, 3 }
   0x4   : > { %p239_p2 = pnand %p638_p0, %p238_p1 }
   0x5   : > { %s639_s30 = sshll.u32 (!%p239_p2), %s634_s25, 2 }
   0x6   : > { %242 = sbr.rel (%p239_p2) target bundleno = 646 (0x286), region = 48  ;;  %p271_p3 = scmp.lt.s32.totalorder (!%p239_p2), %s639_s30, 7 }
   0xb   : > { %v721_v0 = vld [vmem:[%s844_s1 + $0x18] ss:$0 sps:$4 sm:$0xff]   ;;  %vm331_vm0 = vcmask 1042432   ;;  %vm332_vm1 = vcmask 1043456   ;;  %v739_v1 = vmov 65535   ;;  %v722_v5 = vld [vmem:[%s844_s1 + $0x10] sm:$0xff]  }
   0xc   : > { %v333_v2 = vsel %vm331_vm0, 4294967295, %v739_v1  ;;  %v725_v6 = vld [vmem:[%s846_s3 + $0x18] sm:$0xff]   ;;  %v723_v7 = vld [vmem:[%s844_s1 + $0x8] sm:$0xff]   ;;  %s852_s30 = smov (!%p271_p3, %s639_s30), 7  ;;  %vm324_vm2 = vcmask 449536   ;;  %v724_v10 = vld [vmem:[%s844_s1] sm:$0xff]  }
   0xd   : > { %v334_v3 = vsel %vm332_vm1, %v333_v2, 0  ;;  %692 = vmatprep.subr.bf16.mxu1 %v725_v6  ;;  %s640_s12 = sshll.u32 %s852_s30, 3  ;;  %v726_v15 = vld [vmem:[%s846_s3 + $0x10] sm:$0xff]   ;;  %v727_v16 = vld [vmem:[%s846_s3 + $0x8] sm:$0xff]   ;;  %v728_v17 = vld [vmem:[%s846_s3] sm:$0xff]   ;;  %vm432_vm3 = vcmask 523264  }
   0xe   : > { %v336_v4 = vand.u32 %v721_v0, %v334_v3  ;;  %693 = vmatpush3.bf16.msra.mxu1 %v725_v6  ;;  %s274_s15 = scalar_lea.vmem %s843_s0, %s640_s12  ;;  %v643_v20 = vld [vmem:[%s845_s2] ss:$0 sm:$0xff]  ;;  %v729_v33 = vld [vmem:[%s848_s5 + $0x8] sm:$0xff]   ;;  %vm517_vm4 = vcmask 261120   ;;  %s280_s14 = scalar_lea.vmem %s850_s7, %s640_s12  ;;  %vm573_vm5 = vcmask 130048  }
   0xf   : > { %v283_v8 = vld [vmem:[%s274_s15] sm:$0xff]  ;;  %v284_v9 = vld [vmem:[%s274_s15 + $0x8] sm:$0xff]  ;;  %v285_v12 = vld [vmem:[%s274_s15 + $0x10] sm:$0xff]  ;;  %694 = vmatprep.subr.bf16.mxu1 %v726_v15 }
  0x10   : > { %680 = vmatprep.subr.bf16.mxu0 %v336_v4  ;;  %v287_v11 = vpack.c.bf16 %v284_v9, %v283_v8  ;;  %v286_v13 = vld [vmem:[%s274_s15 + $0x18] sm:$0xff]  ;;  %v730_v34 = vld [vmem:[%s848_s5] sm:$0xff]  }
  0x11   : > { %681 = vmatpush3.bf16.msra.mxu0 %v336_v4  ;;  %v288_v14 = vpack.c.bf16 %v286_v13, %v285_v12  ;;  %v650_v37 = vld [vmem:[%s847_s4] ss:$0 sm:$0xff] }
  0x12   : > { %682 = vmatprep.subr.bf16.mxu0 %v722_v5  ;;  %688 = vmatprep.mubr.msk.bf16.mxu0 %vm324_vm2, %v287_v11  ;;  %v657_v51 = vld [vmem:[%s849_s6] ss:$0 sm:$0xff] }
  0x13   : > { %695 = vmatpush3.bf16.msra.mxu1 %v726_v15 }
  0x14   : > { %696 = vmatprep.subr.bf16.mxu1 %v727_v16 }
  0x15   : > { %683 = vmatpush3.bf16.msra.mxu0 %v722_v5 }
  0x16   : > { %684 = vmatprep.subr.bf16.mxu0 %v723_v7 }
  0x17   : > { %697 = vmatpush3.bf16.msra.mxu1 %v727_v16 }
  0x18   : > { %698 = vmatprep.subr.bf16.mxu1 %v728_v17 }
  0x19   : > { %685 = vmatpush3.bf16.msra.mxu0 %v723_v7 }
  0x1a   : > { %686 = vmatprep.subr.bf16.mxu0 %v724_v10 }
  0x1b   : > { %699 = vmatpush3.bf16.msra.mxu1 %v728_v17 }
  0x1d   : > { %687 = vmatpush3.bf16.msra.mxu0 %v724_v10 }
  0x1e   : > { %704 = vmatprep.subr.bf16.mxu0 %v729_v33 }
  0x20   : > { %689 = vmatmul.mubr.msk.bf16.vlgmr.msra.gmra.mxu0 %vm324_vm2, %v288_v14 }
  0x21   : > { %705 = vmatpush3.bf16.msra.mxu0 %v729_v33 }
  0x22   : > { %706 = vmatprep.subr.bf16.mxu0 %v730_v34 }
  0x25   : > { %707 = vmatpush3.bf16.msra.mxu0 %v730_v34 }
  0xe0   : > { %v690_v18 = vpop.f32.mrf.mxu0 }
  0xe1   : > { %v381_v24 = vadd.f32 %v690_v18, %v643_v20 }
  0xe2   : > { %v372_v19 = vpop.f32.mrf.mxu0 }
  0xe3   : > { %v373_v22 = vadd.f32 %v643_v20, %v372_v19  ;;  %v389_v30 = vmax.f32 %v381_v24, 0.0 }
  0xe4   : > { %v691_v21 = vpop.f32.mrf.mxu0 }
  0xe5   : > { %v384_v23 = vadd.f32 %v691_v21, %v643_v20  ;;  %v387_v28 = vmax.f32 %v373_v22, 0.0 }
  0xe6   : > { %v375_v25 = vpop.f32.mrf.mxu0 }
  0xe7   : > { %v376_v26 = vadd.f32 %v643_v20, %v375_v25  ;;  %v390_v27 = vmax.f32 %v384_v23, 0.0 }
  0xe9   : > { %v388_v29 = vmax.f32 %v376_v26, 0.0  ;;  %v392_v32 = vpack.c.bf16 %v390_v27, %v389_v30 }
  0xeb   : > { %v391_v31 = vpack.c.bf16 %v388_v29, %v387_v28 }
  0xed   : > { %700 = vmatprep.mubr.msk.bf16.mxu1 %vm432_vm3, %v391_v31 }
  0xee   : > { %701 = vmatmul.mubr.msk.bf16.vlgmr.msra.gmra.mxu1 %vm432_vm3, %v392_v32 }
 0x1ae   : > { %v702_v35 = vpop.f32.mrf.mxu1 }
 0x1af   : > { %v482_v41 = vadd.f32 %v702_v35, %v650_v37 }
 0x1b0   : > { %v473_v36 = vpop.f32.mrf.mxu1 }
 0x1b1   : > { %v474_v39 = vadd.f32 %v650_v37, %v473_v36  ;;  %v490_v47 = vmax.f32 %v482_v41, 0.0 }
 0x1b2   : > { %v703_v38 = vpop.f32.mrf.mxu1 }
 0x1b3   : > { %v485_v40 = vadd.f32 %v703_v38, %v650_v37  ;;  %v488_v45 = vmax.f32 %v474_v39, 0.0 }
 0x1b4   : > { %v476_v42 = vpop.f32.mrf.mxu1 }
 0x1b5   : > { %v477_v43 = vadd.f32 %v650_v37, %v476_v42  ;;  %v491_v44 = vmax.f32 %v485_v40, 0.0 }
 0x1b7   : > { %v489_v46 = vmax.f32 %v477_v43, 0.0  ;;  %v493_v49 = vpack.c.bf16 %v491_v44, %v490_v47 }
 0x1b9   : > { %v492_v48 = vpack.c.bf16 %v489_v46, %v488_v45 }
 0x1bb   : > { %708 = vmatprep.mubr.msk.bf16.mxu0 %vm517_vm4, %v492_v48 }
 0x1bc   : > { %709 = vmatmul.mubr.msk.bf16.vlgmr.msra.gmra.mxu0 %vm517_vm4, %v493_v49 }
 0x27c   : > { %v710_v50 = vpop.f32.mrf.mxu0 }
 0x27d   : > { %v567_v57 = vadd.f32 %v710_v50, %v657_v51 }
 0x27e   : > { %v558_v52 = vpop.f32.mrf.mxu0 }
 0x27f   : > { %v559_v53 = vadd.f32 %v657_v51, %v558_v52  ;;  %576 = vst.msk [vmem:[%s280_s14 + $0x10] sm:$0xff] %vm573_vm5, %v567_v57 }
 0x280   : > { %v711_v54 = vpop.f32.mrf.mxu0 }
 0x281   : > { %574 = vst.msk [vmem:[%s280_s14] sm:$0xff] %vm573_vm5, %v559_v53  ;;  %v570_v58 = vadd.f32 %v711_v54, %v657_v51 }
 0x282   : > { %v561_v55 = vpop.f32.mrf.mxu0 }
 0x283   : > { %v562_v56 = vadd.f32 %v657_v51, %v561_v55  ;;  %577 = vst.msk [vmem:[%s280_s14 + $0x18] sm:$0xff] %vm573_vm5, %v570_v58 }
 0x285   : > { %575 = vst.msk [vmem:[%s280_s14 + $0x8] sm:$0xff] %vm573_vm5, %v562_v56 }
 0x286 PF: > { %s17_s24 = sadd.s32 1, %s737_s24  }
 0x287   : > { %p14_p4 = scmp.ge.s32.totalorder %s17_s24, 4  }
 0x289   :  { %16 = sbr.rel (!%p14_p4) target bundleno = 1 (0x1), region = 78 }

</bundles_post_ra>
